<compile_context>
chip_gen: v5e
topology: v5e:2x2
jax: 0.10.0
libtpu: 0.0.40
codegen_flags: <defaults>
</compile_context>

<pallas_src>
import functools

import jax
import jax.numpy as jnp
from jax.experimental import pallas as pl
from jax.experimental.pallas import tpu as pltpu


# ~8 MiB blocks: with 1 input + 1 output, each double-buffered, peak pipeline
# VMEM ~= 4 * 8 MiB = 32 MiB.  Explicit vmem limit of 48 MiB leaves headroom
# on v7x (64 MiB physical) and is well below v5e/v6e's 128 MiB physical.
_TARGET_BLOCK_BYTES = 8 * 1024 * 1024
_VMEM_LIMIT_BYTES = 48 * 1024 * 1024


# -----------------------------------------------------------------------------
# 1) Identity: short-circuit.  Do not launch a kernel for a semantic no-op.
# -----------------------------------------------------------------------------
def identity(x: jax.Array) -> jax.Array:
    """The reference op is an identity; the fastest kernel is no kernel."""
    return x


# -----------------------------------------------------------------------------
# 2) Explicit copy as a single HBM->HBM DMA (no VMEM staging, no tile loop).
# -----------------------------------------------------------------------------
def _dma_copy_kernel(x_hbm, o_hbm, sem):
    cp = pltpu.make_async_copy(x_hbm, o_hbm, sem)
    cp.start()
    cp.wait()


def copy_pallas_dma(x: jax.Array) -> jax.Array:
    """HBM->HBM copy with one DMA descriptor (memory_space=pl.ANY)."""
    return pl.pallas_call(
        _dma_copy_kernel,
        out_shape=jax.ShapeDtypeStruct(x.shape, x.dtype),
        in_specs=[pl.BlockSpec(memory_space=pl.ANY)],
        out_specs=pl.BlockSpec(memory_space=pl.ANY),
        scratch_shapes=[pltpu.SemaphoreType.DMA(())],
    )(x)


# -----------------------------------------------------------------------------
# 3) Explicit copy via the BlockSpec pipeline (kept as a tuned reference).
# -----------------------------------------------------------------------------
def _identity_kernel(x_ref, o_ref):
    o_ref[...] = x_ref[...]


def _sublane_multiple(dtype) -> int:
    """Sub-32-bit dtypes pack along sublanes: keep row tiles a multiple of the
    packed sublane count (8 f32, 16 bf16/f16, 32 int8/fp8)."""
    itemsize = jnp.dtype(dtype).itemsize
    return 8 * max(1, 4 // max(1, itemsize))


def _pick_row_tile(rows: int, cols: int, dtype) -> int:
    """Largest legal row tile within the block budget; prefer divisors of
    `rows` (so every block / writeback DMA is full-width and unmasked)."""
    itemsize = jnp.dtype(dtype).itemsize
    sub = _sublane_multiple(dtype)
    bytes_per_row = max(1, cols * itemsize)
    max_rows = max(1, _TARGET_BLOCK_BYTES // bytes_per_row)
    if max_rows >= rows:
        return rows  # full extent is always a legal block dim

    # Prefer the largest divisor of `rows` that fits and is sublane-aligned.
    best_div = 0
    d = 1
    while d * d <= rows:
        if rows % d == 0:
            for cand in (d, rows // d):
                if cand <= max_rows and cand % sub == 0 and cand > best_div:
                    best_div = cand
        d += 1
    if best_div:
        return best_div

    # Fall back to the largest sublane-aligned tile under budget (cdiv grid
    # will mask the ragged last block).
    return max(sub, (max_rows // sub) * sub)


def copy_pallas_pipelined(x: jax.Array, *, alias_in_out: bool = False) -> jax.Array:
    """Copy via VMEM-staged BlockSpec pipeline, large lane-dense blocks.

    Note: `alias_in_out=True` only avoids the second HBM buffer when called
    under jit with the input donated (see copy_pallas_inplace); standalone it
    would force a defensive copy of the input.
    """
    rows, cols = x.shape
    tile_r = _pick_row_tile(rows, cols, x.dtype)

    extra = {}
    if alias_in_out:
        extra["input_output_aliases"] = {0: 0}

    return pl.pallas_call(
        _identity_kernel,
        out_shape=jax.ShapeDtypeStruct((rows, cols), x.dtype),
        grid_spec=pl.GridSpec(
            grid=(pl.cdiv(rows, tile_r),),
            in_specs=[pl.BlockSpec((tile_r, cols), lambda i: (i, 0))],
            out_specs=pl.BlockSpec((tile_r, cols), lambda i: (i, 0)),
        ),
        compiler_params=pltpu.CompilerParams(
            # Lets the v7x megacore shard the row axis (amortizes per-step
            # overhead; HBM bandwidth is shared, so not a 2x).
            dimension_semantics=("parallel",),
            vmem_limit_bytes=_VMEM_LIMIT_BYTES,
        ),
        **extra,
    )(x)


# 4) Aliased variant: only here, under jit with donation, is aliasing enabled.
@functools.partial(jax.jit, donate_argnums=(0,))
def copy_pallas_inplace(x: jax.Array) -> jax.Array:
    return copy_pallas_pipelined(x, alias_in_out=True)


# -----------------------------------------------------------------------------
# JAX mirror of the (empty) PyTorch module.
# -----------------------------------------------------------------------------
class LossFunction:
    """JAX mirror of the (empty) PyTorch LossFunction module."""

    def __init__(self):
        # TODO(synk): reference __init__ defines no parameters; nothing to port.
        pass

    def forward(self):
        # Reference forward() is `pass` -> returns None.  Match that exactly.
        return None

    __call__ = forward


if __name__ == "__main__":
    # Exercise the (empty) module — matches PyTorch semantics.
    module = LossFunction()
    assert module() is None

    # Deterministic demo data: small, lane-dense trailing dim (256 = 2*128).
    key = jax.random.PRNGKey(0)
    x = jax.random.normal(key, (128, 256), dtype=jnp.float32)

    # 1) Identity: short-circuit, no kernel launch, no HBM traffic.
    y0 = identity(x)
    jax.block_until_ready(y0)
    assert y0.shape == x.shape and bool(jnp.allclose(y0, x))

    # 2) Single HBM->HBM DMA copy (pl.ANY, no VMEM staging).
    y1 = copy_pallas_dma(x)
    jax.block_until_ready(y1)
    assert y1.shape == x.shape and bool(jnp.allclose(y1, x))

    # 3) Pipelined copy (tuned blocks / dtype-aware sublane tiles).
    y2 = copy_pallas_pipelined(x)
    jax.block_until_ready(y2)
    assert y2.shape == x.shape and bool(jnp.allclose(y2, x))

    # 4) Aliased/in-place copy: output reuses the donated input's HBM buffer.
    x_donate = jnp.copy(x)
    y3 = copy_pallas_inplace(x_donate)
    jax.block_until_ready(y3)
    assert y3.shape == x.shape and bool(jnp.allclose(y3, x))

    print("KERNEL_OK")
</pallas_src>

<mosaic_0001>
module attributes {stable_mosaic.version = 11 : i64} {
  func.func @_dma_copy_kernel(%arg0: memref<128x256xf32, #tpu.memory_space<any>>, %arg1: memref<128x256xf32, #tpu.memory_space<any>>, %arg2: memref<!tpu.dma_semaphore, #tpu.memory_space<semaphore_mem>>) attributes {dimension_semantics = [], scalar_prefetch = 0 : i64, scratch_operands = 1 : i64, tpu.core_type = #tpu.core_type<tc>} {
    tpu.enqueue_dma source(%arg0 : memref<128x256xf32, #tpu.memory_space<any>>) target(%arg1 : memref<128x256xf32, #tpu.memory_space<any>>) target_semaphore(%arg2 : memref<!tpu.dma_semaphore, #tpu.memory_space<semaphore_mem>>)
    tpu.wait_dma2 semaphore(%arg2 : memref<!tpu.dma_semaphore, #tpu.memory_space<semaphore_mem>>) src(%arg0 : memref<128x256xf32, #tpu.memory_space<any>>) dst(%arg1 : memref<128x256xf32, #tpu.memory_space<any>>)
    return
  }
}

</mosaic_0001>

<bundles_post_ra>
// kernel: tpu_custom_call.1
= control target key start
LH: loop header
LB: loop body
LE: loop exit
PB: predicated region body
PF: predicated region fallthrough
CT: control target
= control target key end

     0   :  { %s33_s12 = smov [#allocation2]   ;;  %s34_s13 = smov [#allocation3]   ;;  %s52_s0 = inlined_call_operand.hbm [shape: f32[128,256], index: 0, kind: input, shape index: {}]   ;;  %s53_s1 = inlined_call_operand.hbm [shape: f32[128,256], index: 1, kind: output, shape index: {}]  }
   0x1   :  { %s10_s8 = sshll.u32 %s52_s0, 4  ;;  %s12_s11 = sshll.u32 %s53_s1, 4  ;;  %s11_s8 = int_to_ptr.hbm [resolvable:$true] %s10_s8  ;;  %s13_s11 = int_to_ptr.hbm [resolvable:$true] %s12_s11 }
   0x2   :  { %s35_s14 = smov 0  }
   0x3   :  { %16 = dma.general %s11_s8, 4096, %s13_s11, %s33_s12, %s34_s13, [#allocation4], %s35_s14, 0  }
   0x4   :  { %31 = dma.done.wait [#allocation2], 4096 }
   0x5   :  { %32 = vsyncadd [#allocation2], 4294963200 }
   0x6   :  { %21 = vsyncmov [#allocation2] }
   0x9   :  { %s22_s15 = vpop.sfrf %21 }
   0xa   :  { %p27_p0 = scmp.ne.s32.totalorder %s22_s15, 0 }
   0xc   :  { %26 = shalt.err (%p27_p0)  }

</bundles_post_ra>
